<compile_context>
chip_gen: v5e
topology: v5e:2x2
jax: 0.10.0
libtpu: 0.0.40
codegen_flags: <defaults>
</compile_context>

<pallas_src>
import functools

import numpy as np
import jax
import jax.numpy as jnp
from jax import lax
from jax.experimental import pallas as pl
from jax.experimental.pallas import tpu as pltpu


def upcna_kernel(x_ref, w_ref, m_ref, o_ref, xx_ref, *,
                 cin, tc, img_w, hw, eps):
    """One (image n, Cout-tile c) grid step.

    x_ref:  (1, Cin, HW)       input image, spatial flattened on lanes
    w_ref:  (1, 4*Tc, 9*Cin)   sub-pixel weights for this Cout tile
    m_ref:  (9, HW)            0/1 border masks, one per 3x3 sub-pixel tap
    o_ref:  (1, 1, 4*Tc, HW)   parity-major normalized+ReLU output
    xx_ref: (Cin, 2*HW)        VMEM scratch: circularly doubled input
    """
    x = x_ref[0]                                   # (Cin, HW)
    w = w_ref[0]                                   # (4*Tc, 9*Cin)

    # Circularly double x so every tap shift becomes one contiguous slice;
    # the border masks zero out wrapped / cross-row values.
    xx_ref[:, 0:hw] = x
    xx_ref[:, hw:2 * hw] = x

    # 9-tap sub-pixel conv: acc[g*Tc + j, p] is the transposed-conv value of
    # tile-channel j, output parity g = 2*a + b, at input position p = h*W+w.
    acc = None
    for dh in range(3):
        for dw in range(3):
            t = dh * 3 + dw
            d0 = ((dh - 1) * img_w + (dw - 1)) % hw
            slab = xx_ref[:, d0:d0 + hw] * m_ref[t:t + 1, :]   # (Cin, HW)
            wt = w[:, t * cin:(t + 1) * cin]                   # (4*Tc, Cin)
            part = lax.dot_general(wt, slab, (((1,), (0,)), ((), ())),
                                   preferred_element_type=jnp.float32)
            acc = part if acc is None else acc + part          # (4*Tc, HW)

    # InstanceNorm2d(affine=False), one-pass stats: each channel's OH*OW =
    # 4*HW outputs are exactly its 4 parity rows.
    inv_m = 1.0 / (4.0 * hw)
    s1 = jnp.sum(acc, axis=1, keepdims=True)                   # (4*Tc, 1)
    s2 = jnp.sum(acc * acc, axis=1, keepdims=True)             # (4*Tc, 1)
    s1c = s1[0:tc] + s1[tc:2 * tc] + s1[2 * tc:3 * tc] + s1[3 * tc:4 * tc]
    s2c = s2[0:tc] + s2[tc:2 * tc] + s2[2 * tc:3 * tc] + s2[3 * tc:4 * tc]
    mean = s1c * inv_m                                         # (Tc, 1)
    var = jnp.maximum(s2c * inv_m - mean * mean, 0.0)          # (Tc, 1)
    scale_c = lax.rsqrt(var + eps)                             # EUP
    off_c = mean * scale_c

    scale = jnp.concatenate([scale_c] * 4, axis=0)             # (4*Tc, 1)
    off = jnp.concatenate([off_c] * 4, axis=0)

    # Normalize + ReLU, full-lane dense store.
    o_ref[0, 0] = jnp.maximum(acc * scale - off, 0.0).astype(o_ref.dtype)


def _pick_cout_tile(cout):
    """Largest multiple-of-8 divisor of Cout (prefer >=2 tiles for v7x's 2 TCs)."""
    divs = [t for t in (64, 48, 32, 24, 16, 8) if cout % t == 0]
    if not divs:
        return cout  # odd Cout: one tile (still correct; slices may relayout)
    multi = [t for t in divs if cout // t >= 2]
    return multi[0] if multi else divs[0]


def _build_subpixel_weight(weight, cin, cout, n_tiles, tc):
    """W_g[g, co, t*Cin+ci] = weight[ci, co, kh, kw], kh = a+3-2*dh,
    kw = b+3-2*dw, g = 2*a+b (zero outside the 4x4 kernel); regrouped into
    Cout tiles with parity-major rows inside each tile."""
    K = weight.shape[2]
    w_g = jnp.zeros((4, cout, 9 * cin), weight.dtype)
    for a in range(2):
        for b in range(2):
            g = 2 * a + b
            for dh in range(3):
                for dw in range(3):
                    kh = a + 3 - 2 * dh
                    kw = b + 3 - 2 * dw
                    if 0 <= kh < K and 0 <= kw < K:
                        t = dh * 3 + dw
                        w_g = w_g.at[g, :, t * cin:(t + 1) * cin].set(
                            weight[:, :, kh, kw].T)
    w_g = w_g.reshape(4, n_tiles, tc, 9 * cin)
    return jnp.transpose(w_g, (1, 0, 2, 3)).reshape(n_tiles, 4 * tc, 9 * cin)


def _build_tap_masks(H, W):
    """(9, H*W) 0/1 masks: mask[t, h*W+w] = 1 iff the (dh-1, dw-1) neighbour
    of (h, w) lies inside the image.  Computed in numpy at trace time."""
    hh, ww = np.meshgrid(np.arange(H), np.arange(W), indexing="ij")
    m = np.zeros((9, H * W), np.float32)
    for dh in range(3):
        for dw in range(3):
            valid = ((hh + dh - 1 >= 0) & (hh + dh - 1 < H)
                     & (ww + dw - 1 >= 0) & (ww + dw - 1 < W))
            m[dh * 3 + dw] = valid.reshape(-1)
    return jnp.asarray(m)


@functools.partial(jax.jit,
                   static_argnames=("stride", "padding", "eps", "depth_to_space"))
def upcna_forward(x_nchw, weight, bias, *, stride=2, padding=1, eps=1e-5,
                  depth_to_space=True):
    """UpCNA forward.

    x_nchw: (N, Cin, H, W) f32, weight: (Cin, Cout, 4, 4) f32 (PyTorch
    ConvTranspose2d layout), bias: (Cout,) f32 (cancelled by InstanceNorm).
    Returns (N, Cout, 2H, 2W) NCHW, or the parity-major pallas output
    (N, NC, 4*Tc, H*W) when depth_to_space=False (for consumer fusion).
    """
    del bias  # per-channel bias is a no-op under InstanceNorm2d(affine=False)
    N, Cin, H, W = x_nchw.shape
    Cout, K = weight.shape[1], weight.shape[2]
    assert (K, stride, padding) == (4, 2, 1), "kernel specialised to k=4,s=2,p=1"
    HW = H * W
    OH, OW = 2 * H, 2 * W
    Tc = _pick_cout_tile(Cout)
    NC = Cout // Tc

    x2 = x_nchw.reshape(N, Cin, HW)                 # free (contiguous) reshape
    w_eff = _build_subpixel_weight(weight, Cin, Cout, NC, Tc)
    masks = _build_tap_masks(H, W)

    kernel = functools.partial(upcna_kernel, cin=Cin, tc=Tc, img_w=W,
                               hw=HW, eps=eps)

    # Explicit scoped-VMEM budget: double-buffered blocks + scratch + acc,
    # with margin; capped under v7x's 64 MiB physical VMEM.
    per_step = 4 * (Cin * HW + 4 * Tc * 9 * Cin + 9 * HW
                    + 4 * Tc * HW + 2 * Cin * HW)
    vmem_limit = int(min(64 * 1024 * 1024, max(16 * 1024 * 1024, 8 * per_step)))

    y = pl.pallas_call(
        kernel,
        out_shape=jax.ShapeDtypeStruct((N, NC, 4 * Tc, HW), x_nchw.dtype),
        grid_spec=pltpu.PrefetchScalarGridSpec(
            num_scalar_prefetch=0,
            grid=(N, NC),
            in_specs=[
                pl.BlockSpec((1, Cin, HW), lambda n, c: (n, 0, 0)),
                pl.BlockSpec((1, 4 * Tc, 9 * Cin), lambda n, c: (c, 0, 0)),
                pl.BlockSpec((9, HW), lambda n, c: (0, 0)),
            ],
            out_specs=pl.BlockSpec((1, 1, 4 * Tc, HW),
                                   lambda n, c: (n, c, 0, 0)),
            scratch_shapes=[pltpu.VMEM((Cin, 2 * HW), jnp.float32)],
        ),
        compiler_params=pltpu.CompilerParams(
            dimension_semantics=("parallel", "parallel"),
            vmem_limit_bytes=vmem_limit),
    )(x2, w_eff, masks)

    if not depth_to_space:
        # Parity-major layout for a fused consumer:
        # y[n, c, (2a+b)*Tc + j, h*W + w] -> channel c*Tc+j at (2h+a, 2w+b).
        return y

    # Depth-to-space to NCHW (single XLA transpose of the output).
    # TODO(synk): fuse this 2x2 interleave into the kernel epilogue (strided
    # stores) to remove the extra output-sized HBM round trip.
    y = y.reshape(N, NC, 2, 2, Tc, H, W)
    y = jnp.transpose(y, (0, 1, 4, 5, 2, 6, 3))     # (n, c, j, h, a, w, b)
    return y.reshape(N, Cout, OH, OW)


def upcna_reference(x_nchw, weight, bias, *, stride=2, padding=1, eps=1e-5):
    """Pure-JAX reference (conv-transpose + bias + instance-norm + relu)."""
    N, Cin, H, W = x_nchw.shape
    Cout, K = weight.shape[1], weight.shape[2]
    OH = (H - 1) * stride - 2 * padding + K
    OW = (W - 1) * stride - 2 * padding + K
    x = jnp.transpose(x_nchw, (0, 2, 3, 1))
    up_h, up_w = (H - 1) * stride + 1, (W - 1) * stride + 1
    x_up = jnp.zeros((N, up_h, up_w, Cin), x.dtype).at[:, ::stride, ::stride, :].set(x)
    p = K - 1 - padding
    x_pad = jnp.pad(x_up, ((0, 0), (p, p), (p, p), (0, 0)))
    w_conv = jnp.transpose(weight[:, :, ::-1, ::-1], (2, 3, 0, 1))
    acc = jnp.zeros((N, OH, OW, Cout), jnp.float32)
    for kh in range(K):
        for kw in range(K):
            acc = acc + jnp.einsum(
                "nhwc,cd->nhwd", x_pad[:, kh:kh + OH, kw:kw + OW, :], w_conv[kh, kw])
    acc = acc + bias[None, None, None, :]
    mean = jnp.mean(acc, axis=(1, 2), keepdims=True)
    var = jnp.mean((acc - mean) ** 2, axis=(1, 2), keepdims=True)
    y = jnp.maximum((acc - mean) * lax.rsqrt(var + eps), 0.0)
    return jnp.transpose(y, (0, 3, 1, 2))


if __name__ == "__main__":
    # Small shapes consistent with the module: batch=2, in_c=4, out_c=8, 16x16.
    N, IN_C, OUT_C, H, W = 2, 4, 8, 16, 16
    key = jax.random.PRNGKey(0)
    kx, kw, kb = jax.random.split(key, 3)

    x = jax.random.normal(kx, (N, IN_C, H, W), dtype=jnp.float32)
    # Deterministic synthetic ConvTranspose2d parameters (PyTorch layout:
    # weight (in_c, out_c, kH, kW), bias (out_c,)).
    weight = 0.1 * jax.random.normal(kw, (IN_C, OUT_C, 4, 4), dtype=jnp.float32)
    bias = 0.1 * jax.random.normal(kb, (OUT_C,), dtype=jnp.float32)

    out = jax.block_until_ready(upcna_forward(x, weight, bias))
    assert out.shape == (N, OUT_C, 2 * H, 2 * W), out.shape

    ref = jax.block_until_ready(upcna_reference(x, weight, bias))
    err = float(jnp.max(jnp.abs(out - ref)))
    assert jnp.allclose(out, ref, atol=1e-4, rtol=1e-4), err

    print("KERNEL_OK")
</pallas_src>

<mosaic_0001>
module attributes {stable_mosaic.version = 11 : i64} {
  func.func @upcna_kernel(%arg0: i32, %arg1: i32, %arg2: memref<1x4x256xf32, #tpu.memory_space<vmem>>, %arg3: memref<1x32x36xf32, #tpu.memory_space<vmem>>, %arg4: memref<9x256xf32, #tpu.memory_space<vmem>>, %arg5: memref<1x1x32x256xf32, #tpu.memory_space<vmem>>, %arg6: memref<4x512xf32, #tpu.memory_space<vmem>>) attributes {dimension_semantics = [#tpu.dimension_semantics<parallel>, #tpu.dimension_semantics<parallel>], iteration_bounds = array<i64: 2, 1>, scalar_prefetch = 0 : i64, scratch_operands = 1 : i64, tpu.core_type = #tpu.core_type<tc>, window_params = [{transform_indices = @transform_0, window_bounds = array<i64: 1, 4, 256>}, {transform_indices = @transform_1, window_bounds = array<i64: 1, 32, 36>}, {pipeline_mode = #tpu.pipeline_mode<synchronous>, transform_indices = @transform_2, window_bounds = array<i64: 9, 256>}, {transform_indices = @transform_3, window_bounds = array<i64: 1, 1, 32, 256>}]} {
    %c0 = arith.constant 0 : index
    %c0_0 = arith.constant 0 : index
    %c0_1 = arith.constant 0 : index
    %0 = vector.load %arg2[%c0, %c0_0, %c0_1] : memref<1x4x256xf32, #tpu.memory_space<vmem>>, vector<1x4x256xf32>
    %1 = vector.shape_cast %0 : vector<1x4x256xf32> to vector<4x256xf32>
    %c0_2 = arith.constant 0 : index
    %c0_3 = arith.constant 0 : index
    %c0_4 = arith.constant 0 : index
    %2 = vector.load %arg3[%c0_2, %c0_3, %c0_4] : memref<1x32x36xf32, #tpu.memory_space<vmem>>, vector<1x32x36xf32>
    %3 = vector.shape_cast %2 : vector<1x32x36xf32> to vector<32x36xf32>
    %c0_5 = arith.constant 0 : index
    %c0_6 = arith.constant 0 : index
    %4 = vector.load %arg6[%c0_5, %c0_6] : memref<4x512xf32, #tpu.memory_space<vmem>>, vector<4x256xf32>
    tpu.vector_store %arg6[%c0_5, %c0_6], %1 {strides = array<i32>} : memref<4x512xf32, #tpu.memory_space<vmem>>, vector<4x256xf32>,
    %c0_7 = arith.constant 0 : index
    %c256 = arith.constant 256 : index
    %5 = vector.load %arg6[%c0_7, %c256] : memref<4x512xf32, #tpu.memory_space<vmem>>, vector<4x256xf32>
    tpu.vector_store %arg6[%c0_7, %c256], %1 {strides = array<i32>} : memref<4x512xf32, #tpu.memory_space<vmem>>, vector<4x256xf32>,
    %c0_8 = arith.constant 0 : index
    %c239 = arith.constant 239 : index
    %6 = vector.load %arg6[%c0_8, %c239] : memref<4x512xf32, #tpu.memory_space<vmem>>, vector<4x256xf32>
    %c0_9 = arith.constant 0 : index
    %c0_10 = arith.constant 0 : index
    %7 = vector.load %arg4[%c0_9, %c0_10] : memref<9x256xf32, #tpu.memory_space<vmem>>, vector<1x256xf32>
    %8 = vector.broadcast %7 : vector<1x256xf32> to vector<4x256xf32>
    %9 = arith.mulf %6, %8 : vector<4x256xf32>
    %10 = vector.extract_strided_slice %3 {offsets = [0, 0], sizes = [32, 4], strides = [1, 1]} : vector<32x36xf32> to vector<32x4xf32>
    %cst = arith.constant dense<0.000000e+00> : vector<32x256xf32>
    %11 = tpu.matmul %10, %9, %cst {dimension_numbers = #tpu.dot_dimension_numbers<[1], [0], [0], [1], [0, 0, 1, 1], [], []>} : vector<32x4xf32>, vector<4x256xf32>, vector<32x256xf32> -> vector<32x256xf32>
    %c0_11 = arith.constant 0 : index
    %c240 = arith.constant 240 : index
    %12 = vector.load %arg6[%c0_11, %c240] : memref<4x512xf32, #tpu.memory_space<vmem>>, vector<4x256xf32>
    %c1 = arith.constant 1 : index
    %c0_12 = arith.constant 0 : index
    %13 = vector.load %arg4[%c1, %c0_12] : memref<9x256xf32, #tpu.memory_space<vmem>>, vector<1x256xf32>
    %14 = vector.broadcast %13 : vector<1x256xf32> to vector<4x256xf32>
    %15 = arith.mulf %12, %14 : vector<4x256xf32>
    %16 = vector.extract_strided_slice %3 {offsets = [0, 4], sizes = [32, 4], strides = [1, 1]} : vector<32x36xf32> to vector<32x4xf32>
    %cst_13 = arith.constant dense<0.000000e+00> : vector<32x256xf32>
    %17 = tpu.matmul %16, %15, %cst_13 {dimension_numbers = #tpu.dot_dimension_numbers<[1], [0], [0], [1], [0, 0, 1, 1], [], []>} : vector<32x4xf32>, vector<4x256xf32>, vector<32x256xf32> -> vector<32x256xf32>
    %18 = arith.addf %11, %17 : vector<32x256xf32>
    %c0_14 = arith.constant 0 : index
    %c241 = arith.constant 241 : index
    %19 = vector.load %arg6[%c0_14, %c241] : memref<4x512xf32, #tpu.memory_space<vmem>>, vector<4x256xf32>
    %c2 = arith.constant 2 : index
    %c0_15 = arith.constant 0 : index
    %20 = vector.load %arg4[%c2, %c0_15] : memref<9x256xf32, #tpu.memory_space<vmem>>, vector<1x256xf32>
    %21 = vector.broadcast %20 : vector<1x256xf32> to vector<4x256xf32>
    %22 = arith.mulf %19, %21 : vector<4x256xf32>
    %23 = vector.extract_strided_slice %3 {offsets = [0, 8], sizes = [32, 4], strides = [1, 1]} : vector<32x36xf32> to vector<32x4xf32>
    %cst_16 = arith.constant dense<0.000000e+00> : vector<32x256xf32>
    %24 = tpu.matmul %23, %22, %cst_16 {dimension_numbers = #tpu.dot_dimension_numbers<[1], [0], [0], [1], [0, 0, 1, 1], [], []>} : vector<32x4xf32>, vector<4x256xf32>, vector<32x256xf32> -> vector<32x256xf32>
    %25 = arith.addf %18, %24 : vector<32x256xf32>
    %c0_17 = arith.constant 0 : index
    %c255 = arith.constant 255 : index
    %26 = vector.load %arg6[%c0_17, %c255] : memref<4x512xf32, #tpu.memory_space<vmem>>, vector<4x256xf32>
    %c3 = arith.constant 3 : index
    %c0_18 = arith.constant 0 : index
    %27 = vector.load %arg4[%c3, %c0_18] : memref<9x256xf32, #tpu.memory_space<vmem>>, vector<1x256xf32>
    %28 = vector.broadcast %27 : vector<1x256xf32> to vector<4x256xf32>
    %29 = arith.mulf %26, %28 : vector<4x256xf32>
    %30 = vector.extract_strided_slice %3 {offsets = [0, 12], sizes = [32, 4], strides = [1, 1]} : vector<32x36xf32> to vector<32x4xf32>
    %cst_19 = arith.constant dense<0.000000e+00> : vector<32x256xf32>
    %31 = tpu.matmul %30, %29, %cst_19 {dimension_numbers = #tpu.dot_dimension_numbers<[1], [0], [0], [1], [0, 0, 1, 1], [], []>} : vector<32x4xf32>, vector<4x256xf32>, vector<32x256xf32> -> vector<32x256xf32>
    %32 = arith.addf %25, %31 : vector<32x256xf32>
    %c0_20 = arith.constant 0 : index
    %c0_21 = arith.constant 0 : index
    %33 = vector.load %arg6[%c0_20, %c0_21] : memref<4x512xf32, #tpu.memory_space<vmem>>, vector<4x256xf32>
    %c4 = arith.constant 4 : index
    %c0_22 = arith.constant 0 : index
    %34 = vector.load %arg4[%c4, %c0_22] : memref<9x256xf32, #tpu.memory_space<vmem>>, vector<1x256xf32>
    %35 = vector.broadcast %34 : vector<1x256xf32> to vector<4x256xf32>
    %36 = arith.mulf %33, %35 : vector<4x256xf32>
    %37 = vector.extract_strided_slice %3 {offsets = [0, 16], sizes = [32, 4], strides = [1, 1]} : vector<32x36xf32> to vector<32x4xf32>
    %cst_23 = arith.constant dense<0.000000e+00> : vector<32x256xf32>
    %38 = tpu.matmul %37, %36, %cst_23 {dimension_numbers = #tpu.dot_dimension_numbers<[1], [0], [0], [1], [0, 0, 1, 1], [], []>} : vector<32x4xf32>, vector<4x256xf32>, vector<32x256xf32> -> vector<32x256xf32>
    %39 = arith.addf %32, %38 : vector<32x256xf32>
    %c0_24 = arith.constant 0 : index
    %c1_25 = arith.constant 1 : index
    %40 = vector.load %arg6[%c0_24, %c1_25] : memref<4x512xf32, #tpu.memory_space<vmem>>, vector<4x256xf32>
    %c5 = arith.constant 5 : index
    %c0_26 = arith.constant 0 : index
    %41 = vector.load %arg4[%c5, %c0_26] : memref<9x256xf32, #tpu.memory_space<vmem>>, vector<1x256xf32>
    %42 = vector.broadcast %41 : vector<1x256xf32> to vector<4x256xf32>
    %43 = arith.mulf %40, %42 : vector<4x256xf32>
    %44 = vector.extract_strided_slice %3 {offsets = [0, 20], sizes = [32, 4], strides = [1, 1]} : vector<32x36xf32> to vector<32x4xf32>
    %cst_27 = arith.constant dense<0.000000e+00> : vector<32x256xf32>
    %45 = tpu.matmul %44, %43, %cst_27 {dimension_numbers = #tpu.dot_dimension_numbers<[1], [0], [0], [1], [0, 0, 1, 1], [], []>} : vector<32x4xf32>, vector<4x256xf32>, vector<32x256xf32> -> vector<32x256xf32>
    %46 = arith.addf %39, %45 : vector<32x256xf32>
    %c0_28 = arith.constant 0 : index
    %c15 = arith.constant 15 : index
    %47 = vector.load %arg6[%c0_28, %c15] : memref<4x512xf32, #tpu.memory_space<vmem>>, vector<4x256xf32>
    %c6 = arith.constant 6 : index
    %c0_29 = arith.constant 0 : index
    %48 = vector.load %arg4[%c6, %c0_29] : memref<9x256xf32, #tpu.memory_space<vmem>>, vector<1x256xf32>
    %49 = vector.broadcast %48 : vector<1x256xf32> to vector<4x256xf32>
    %50 = arith.mulf %47, %49 : vector<4x256xf32>
    %51 = vector.extract_strided_slice %3 {offsets = [0, 24], sizes = [32, 4], strides = [1, 1]} : vector<32x36xf32> to vector<32x4xf32>
    %cst_30 = arith.constant dense<0.000000e+00> : vector<32x256xf32>
    %52 = tpu.matmul %51, %50, %cst_30 {dimension_numbers = #tpu.dot_dimension_numbers<[1], [0], [0], [1], [0, 0, 1, 1], [], []>} : vector<32x4xf32>, vector<4x256xf32>, vector<32x256xf32> -> vector<32x256xf32>
    %53 = arith.addf %46, %52 : vector<32x256xf32>
    %c0_31 = arith.constant 0 : index
    %c16 = arith.constant 16 : index
    %54 = vector.load %arg6[%c0_31, %c16] : memref<4x512xf32, #tpu.memory_space<vmem>>, vector<4x256xf32>
    %c7 = arith.constant 7 : index
    %c0_32 = arith.constant 0 : index
    %55 = vector.load %arg4[%c7, %c0_32] : memref<9x256xf32, #tpu.memory_space<vmem>>, vector<1x256xf32>
    %56 = vector.broadcast %55 : vector<1x256xf32> to vector<4x256xf32>
    %57 = arith.mulf %54, %56 : vector<4x256xf32>
    %58 = vector.extract_strided_slice %3 {offsets = [0, 28], sizes = [32, 4], strides = [1, 1]} : vector<32x36xf32> to vector<32x4xf32>
    %cst_33 = arith.constant dense<0.000000e+00> : vector<32x256xf32>
    %59 = tpu.matmul %58, %57, %cst_33 {dimension_numbers = #tpu.dot_dimension_numbers<[1], [0], [0], [1], [0, 0, 1, 1], [], []>} : vector<32x4xf32>, vector<4x256xf32>, vector<32x256xf32> -> vector<32x256xf32>
    %60 = arith.addf %53, %59 : vector<32x256xf32>
    %c0_34 = arith.constant 0 : index
    %c17 = arith.constant 17 : index
    %61 = vector.load %arg6[%c0_34, %c17] : memref<4x512xf32, #tpu.memory_space<vmem>>, vector<4x256xf32>
    %c8 = arith.constant 8 : index
    %c0_35 = arith.constant 0 : index
    %62 = vector.load %arg4[%c8, %c0_35] : memref<9x256xf32, #tpu.memory_space<vmem>>, vector<1x256xf32>
    %63 = vector.broadcast %62 : vector<1x256xf32> to vector<4x256xf32>
    %64 = arith.mulf %61, %63 : vector<4x256xf32>
    %65 = vector.extract_strided_slice %3 {offsets = [0, 32], sizes = [32, 4], strides = [1, 1]} : vector<32x36xf32> to vector<32x4xf32>
    %cst_36 = arith.constant dense<0.000000e+00> : vector<32x256xf32>
    %66 = tpu.matmul %65, %64, %cst_36 {dimension_numbers = #tpu.dot_dimension_numbers<[1], [0], [0], [1], [0, 0, 1, 1], [], []>} : vector<32x4xf32>, vector<4x256xf32>, vector<32x256xf32> -> vector<32x256xf32>
    %67 = arith.addf %60, %66 : vector<32x256xf32>
    %cst_37 = arith.constant dense<0.000000e+00> : vector<32xf32>
    %68 = vector.multi_reduction <add>, %67, %cst_37 [1] : vector<32x256xf32> to vector<32xf32>
    %69 = vector.shape_cast %68 : vector<32xf32> to vector<32x1xf32>
    %70 = arith.mulf %67, %67 : vector<32x256xf32>
    %cst_38 = arith.constant dense<0.000000e+00> : vector<32xf32>
    %71 = vector.multi_reduction <add>, %70, %cst_38 [1] : vector<32x256xf32> to vector<32xf32>
    %72 = vector.shape_cast %71 : vector<32xf32> to vector<32x1xf32>
    %73 = vector.extract_strided_slice %69 {offsets = [0, 0], sizes = [8, 1], strides = [1, 1]} : vector<32x1xf32> to vector<8x1xf32>
    %74 = vector.extract_strided_slice %69 {offsets = [8, 0], sizes = [8, 1], strides = [1, 1]} : vector<32x1xf32> to vector<8x1xf32>
    %75 = arith.addf %73, %74 : vector<8x1xf32>
    %76 = vector.extract_strided_slice %69 {offsets = [16, 0], sizes = [8, 1], strides = [1, 1]} : vector<32x1xf32> to vector<8x1xf32>
    %77 = arith.addf %75, %76 : vector<8x1xf32>
    %78 = vector.extract_strided_slice %69 {offsets = [24, 0], sizes = [8, 1], strides = [1, 1]} : vector<32x1xf32> to vector<8x1xf32>
    %79 = arith.addf %77, %78 : vector<8x1xf32>
    %80 = vector.extract_strided_slice %72 {offsets = [0, 0], sizes = [8, 1], strides = [1, 1]} : vector<32x1xf32> to vector<8x1xf32>
    %81 = vector.extract_strided_slice %72 {offsets = [8, 0], sizes = [8, 1], strides = [1, 1]} : vector<32x1xf32> to vector<8x1xf32>
    %82 = arith.addf %80, %81 : vector<8x1xf32>
    %83 = vector.extract_strided_slice %72 {offsets = [16, 0], sizes = [8, 1], strides = [1, 1]} : vector<32x1xf32> to vector<8x1xf32>
    %84 = arith.addf %82, %83 : vector<8x1xf32>
    %85 = vector.extract_strided_slice %72 {offsets = [24, 0], sizes = [8, 1], strides = [1, 1]} : vector<32x1xf32> to vector<8x1xf32>
    %86 = arith.addf %84, %85 : vector<8x1xf32>
    %cst_39 = arith.constant 9.765625E-4 : f32
    %87 = vector.broadcast %cst_39 : f32 to vector<8x1xf32>
    %88 = arith.mulf %79, %87 : vector<8x1xf32>
    %cst_40 = arith.constant 9.765625E-4 : f32
    %89 = vector.broadcast %cst_40 : f32 to vector<8x1xf32>
    %90 = arith.mulf %86, %89 : vector<8x1xf32>
    %91 = arith.mulf %88, %88 : vector<8x1xf32>
    %92 = arith.subf %90, %91 : vector<8x1xf32>
    %cst_41 = arith.constant 0.000000e+00 : f32
    %93 = vector.broadcast %cst_41 : f32 to vector<8x1xf32>
    %94 = arith.maximumf %92, %93 : vector<8x1xf32>
    %cst_42 = arith.constant 9.99999974E-6 : f32
    %95 = vector.broadcast %cst_42 : f32 to vector<8x1xf32>
    %96 = arith.addf %94, %95 : vector<8x1xf32>
    %97 = math.rsqrt %96 : vector<8x1xf32>
    %98 = arith.mulf %88, %97 : vector<8x1xf32>
    %99 = tpu.concatenate %97, %97, %97, %97 in 0 : vector<8x1xf32>, vector<8x1xf32>, vector<8x1xf32>, vector<8x1xf32> -> vector<32x1xf32>
    %100 = tpu.concatenate %98, %98, %98, %98 in 0 : vector<8x1xf32>, vector<8x1xf32>, vector<8x1xf32>, vector<8x1xf32> -> vector<32x1xf32>
    %101 = vector.broadcast %99 : vector<32x1xf32> to vector<32x256xf32>
    %102 = arith.mulf %67, %101 : vector<32x256xf32>
    %103 = vector.broadcast %100 : vector<32x1xf32> to vector<32x256xf32>
    %104 = arith.subf %102, %103 : vector<32x256xf32>
    %cst_43 = arith.constant 0.000000e+00 : f32
    %105 = vector.broadcast %cst_43 : f32 to vector<32x256xf32>
    %106 = arith.maximumf %104, %105 : vector<32x256xf32>
    %c0_44 = arith.constant 0 : index
    %c0_45 = arith.constant 0 : index
    %c0_46 = arith.constant 0 : index
    %c0_47 = arith.constant 0 : index
    %107 = vector.load %arg5[%c0_44, %c0_45, %c0_46, %c0_47] : memref<1x1x32x256xf32, #tpu.memory_space<vmem>>, vector<1x1x32x256xf32>
    %108 = vector.shape_cast %107 : vector<1x1x32x256xf32> to vector<32x256xf32>
    %109 = vector.shape_cast %106 : vector<32x256xf32> to vector<1x1x32x256xf32>
    tpu.vector_store %arg5[%c0_44, %c0_45, %c0_46, %c0_47], %109 {strides = array<i32>} : memref<1x1x32x256xf32, #tpu.memory_space<vmem>>, vector<1x1x32x256xf32>,
    return
  }
  func.func @transform_0(%arg0: i32, %arg1: i32) -> (i32, i32, i32) {
    %c0_i32 = arith.constant 0 : i32
    %c0_i32_0 = arith.constant 0 : i32
    %c0_i32_1 = arith.constant 0 : i32
    return %arg0, %c0_i32, %c0_i32_0 : i32, i32, i32
  }
  func.func @transform_1(%arg0: i32, %arg1: i32) -> (i32, i32, i32) {
    %c0_i32 = arith.constant 0 : i32
    %c0_i32_0 = arith.constant 0 : i32
    %c0_i32_1 = arith.constant 0 : i32
    return %arg1, %c0_i32, %c0_i32_0 : i32, i32, i32
  }
  func.func @transform_2(%arg0: i32, %arg1: i32) -> (i32, i32) {
    %c0_i32 = arith.constant 0 : i32
    %c0_i32_0 = arith.constant 0 : i32
    %c0_i32_1 = arith.constant 0 : i32
    return %c0_i32, %c0_i32_0 : i32, i32
  }
  func.func @transform_3(%arg0: i32, %arg1: i32) -> (i32, i32, i32, i32) {
    %c0_i32 = arith.constant 0 : i32
    %c0_i32_0 = arith.constant 0 : i32
    %c0_i32_1 = arith.constant 0 : i32
    return %arg0, %arg1, %c0_i32, %c0_i32_0 : i32, i32, i32, i32
  }
}

</mosaic_0001>

<bundles_post_ra>
// kernel: upcna_forward.1
= control target key start
LH: loop header
LB: loop body
LE: loop exit
PB: predicated region body
PF: predicated region fallthrough
CT: control target
= control target key end

     0   :  { %s1673_s12 = smov 0   ;;  %s1675_s13 = smov 0   ;;  %s2083_s0 = inlined_call_operand.vmem [shape: f32[2,4,256], index: 0, kind: input, shape index: {}]   ;;  %s2084_s1 = inlined_call_operand.vmem [shape: f32[1,32,36], index: 1, kind: input, shape index: {}]   ;;  %s2085_s2 = inlined_call_operand.vmem [shape: f32[9,256], index: 2, kind: input, shape index: {}]   ;;  %s2086_s3 = inlined_call_operand.vmem [shape: f32[2,1,32,256], index: 3, kind: output, shape index: {}]  }
   0x1   :  { %s1677_s14 = smov 0  }
   0x2 LB: > { %s25_s15 = sadd.s32 1, %s1631_s13  ;;  %p1460_p0 = scmp.ge.s32.totalorder %s1635_s14, 1  ;;  %s1635_s14 = sphi %s1677_s14, %s13_s14   ;;  %s1631_s13 = sphi %s1675_s13, %s2088_s13   ;;  %s1627_s12 = sphi %s1673_s12, %s2087_s12  }
   0x3   : > { %p27_p1 = scmp.ge.s32.totalorder %s25_s15, 2  ;;  %p161_p2 = scmp.lt.s32.totalorder %s1635_s14, 3 }
   0x5   : > { %s2090_s15 = smov (%p27_p1, %s25_s15), 0  ;;  %p162_p3 = pnand %p1460_p0, %p161_p2 }
   0x6   : > { %s1637_s26 = smov (!%p162_p3), 124   ;;  %s1638_s27 = smov (!%p162_p3), 112  }
   0x7   : > { %165 = sbr.rel (%p162_p3) target bundleno = 881 (0x371), region = 32  ;;  %s1639_s28 = smov (!%p162_p3), 113  }
   0x8   : > { %s1640_s29 = smov (!%p162_p3), 120   ;;  %s1641_s30 = smov (!%p162_p3), 111  }
   0x9   : > { %s1642_s4 = smov (!%p162_p3), 127   ;;  %p194_p4 = scmp.lt.s32.totalorder (!%p162_p3), %s1627_s12, 1 }
   0xa   : > { %s1643_s21 = smov (!%p162_p3), 16   ;;  %s1645_s5 = smov (!%p162_p3), 17  }
   0xb   : > { %s1646_s6 = smov (!%p162_p3), 15   ;;  %s1647_s9 = smov (!%p162_p3), 116  }
   0xc   : > { %v1465_v0 = vld [vmem:[%s2085_s2 + $0x1] ss:$8 sm:$0x3]  ;;  %v222_v3 = vld [vmem:[%s2085_s2] ss:$8 sm:$0x3] }
   0xd   : > { %v241_v1 = vperm.slane %v1465_v0, 0  ;;  %v242_v2 = vperm.slane %v1465_v0, 1  ;;  %vm227_vm0 = vcmask 1043456   ;;  %v225_v4 = vperm.slane %v222_v3, 1  ;;  %v1708_v10 = vld [vmem:[%s2084_s1] sm:$0xff]  ;;  %v1725_v21 = vld [vmem:[%s2084_s1 + $0x10] sm:$0xff] }
   0xe   : > { %v1486_v5 = vld [vmem:[%s2085_s2 + $0x2] ss:$8 sm:$0x3]  ;;  %v1497_v9 = vld [vmem:[%s2085_s2 + $0x3] ss:$8 sm:$0x3]  ;;  %258 = vrot.lane.b32.xlu2 %v1708_v10, %s1637_s26 }
   0xf   : > { %v243_v6 = vrot.slane %v242_v2, 4  ;;  %v446_v7 = vperm.slane %v1486_v5, 0  ;;  %v447_v8 = vperm.slane %v1486_v5, 1  ;;  %v568_v13 = vperm.slane %v1497_v9, 1  ;;  %s2092_s12 = smov (!%p194_p4, %s1627_s12), 1  ;;  %v1744_v23 = vld [vmem:[%s2084_s1 + $0x18] sm:$0xff] }
  0x10   : > { %v224_v14 = vperm.slane %v222_v3, 0  ;;  %v226_v15 = vrot.slane %v225_v4, 4  ;;  %v567_v17 = vperm.slane %v1497_v9, 0  ;;  %s1565_s7 = sshll.u32 %s2092_s12, 3  ;;  %v1751_v24 = vld [vmem:[%s2084_s1 + $0x8] sm:$0xff]  ;;  %vm248_vm1 = vcmask 916480  }
  0x11   : > { %v244_v11 = vsel %vm227_vm0, %v241_v1, %v243_v6  ;;  %v448_v12 = vrot.slane %v447_v8, 4  ;;  %v569_v18 = vrot.slane %v568_v13, 4  ;;  %s198_s10 = scalar_lea.vmem %s2083_s0, %s1565_s7  ;;  %v1519_v32 = vld [vmem:[%s2085_s2 + $0x5] ss:$8 sm:$0x3]  ;;  %vm232_vm2 = vcmask 908288  }
  0x12   : > { %245 = vrot.lane.b32.xlu0 %v244_v11, %s1638_s27  ;;  %v228_v19 = vsel %vm227_vm0, %v224_v14, %v226_v15  ;;  %v1737_v22 = vld [vmem:[%s198_s10] sm:$0xff]  ;;  %v789_v36 = vperm.slane %v1519_v32, 1  ;;  %vm453_vm3 = vcmask 924672   ;;  %v788_v44 = vperm.slane %v1519_v32, 0  ;;  %s1648_s11 = smov 108  }
  0x13   : > { %v449_v16 = vsel %vm227_vm0, %v446_v7, %v448_v12  ;;  %v570_v20 = vsel %vm227_vm0, %v567_v17, %v569_v18  ;;  %218 = vst [vmem:[#allocation2] sm:$0xff] %v1737_v22  ;;  %v1530_v48 = vld [vmem:[%s2085_s2 + $0x6] ss:$8 sm:$0x3]  ;;  %vm574_vm4 = vcmask 1039360   ;;  %vm280_vm5 = vcmask 130048  }
  0x14   : > { %450 = vrot.lane.b32.xlu1 %v449_v16, %s1639_s28  ;;  %219 = vst [vmem:[#allocation2 + $0x8] sm:$0xff] %v1737_v22  ;;  %v790_v45 = vrot.slane %v789_v36, 4  ;;  %v908_v53 = vperm.slane %v1530_v48, 1  ;;  %v1508_v55 = vld [vmem:[%s2085_s2 + $0x4] ss:$8 sm:$0x3] }
  0x15   : > { %v688_v59 = vperm.slane %v1508_v55, 1  ;;  %v907_v60 = vperm.slane %v1530_v48, 0  ;;  %v687_v1 = vperm.slane %v1508_v55, 0  ;;  %v1541_v13 = vld [vmem:[%s2085_s2 + $0x7] ss:$8 sm:$0x3] }
  0x16   : > { %459 = vrot.lane.b32.xlu2 %v1708_v10, %s1640_s29  ;;  %v791_v51 = vsel %vm227_vm0, %v788_v44, %v790_v45  ;;  %v909_v61 = vrot.slane %v908_v53, 4  ;;  %v1027_v14 = vperm.slane %v1541_v13, 1  ;;  %v1026_v15 = vperm.slane %v1541_v13, 0 }
  0x17   : > { %v689_v2 = vrot.slane %v688_v59, 4  ;;  %vm283_vm6 = vcmask 31744   ;;  %vm368_vm7 = vcmask 138240   ;;  %vm602_vm8 = vcmask 7168  }
  0x18   : > { %v910_v3 = vsel %vm227_vm0, %v907_v60, %v909_v61  ;;  %v1028_v16 = vrot.slane %v1027_v14, 4  ;;  %vm481_vm9 = vcmask 121856  }
  0x19   : > { %v690_v8 = vsel %vm227_vm0, %v687_v1, %v689_v2 }
  0x1a   : > { %229 = vrot.lane.b32.xlu0 %v228_v19, %s1641_s30  ;;  %v692_v9 = vmul.f32 %v690_v8, %v1737_v22  ;;  %v1029_v18 = vsel %vm227_vm0, %v1026_v15, %v1028_v16  ;;  %v1552_v19 = vld [vmem:[%s2085_s2 + $0x10] ss:$8 sm:$0x3] }
  0x1b   : > { %v221_v26 = vld [vmem:[#allocation2 + $0xc] sm:$0xf]  ;;  %v220_v27 = vld [vmem:[#allocation2 + $0x4] sm:$0xff] }
  0x1c   : > { %571 = vrot.lane.b32.xlu1 %v570_v20, %s1642_s4  ;;  %v442_v47 = vld [vmem:[#allocation2 + $0xc] sm:$0xf]  ;;  %v1146_v20 = vperm.slane %v1552_v19, 1  ;;  %v903_v53 = vld [vmem:[#allocation2 + $0x8] sm:$0xf] }
  0x1d   : > { %v563_v63 = vld [vmem:[#allocation2 + $0xc] sm:$0xf] }
  0x22   : > { %264 = vrot.lane.b32.xlu0 %v1744_v23, %s1637_s26 }
  0x24   : > { %262 = vrot.lane.b32.xlu1 %v1725_v21, %s1637_s26 }
  0x2c   : > { %260 = vrot.lane.b32.xlu1 %v1751_v24, %s1637_s26  ;;  %s1644_s26 = smov 1  }
  0x34   : > { %461 = vrot.lane.b32.xlu1 %v1751_v24, %s1640_s29 }
  0x84   : > { %v246_v25 = vpop.permute.xlu0 %245 }
  0x85   : > { %v247_v28 = vrot.slane %v246_v25, 4 }
  0x86   : > { %v451_v34 = vpop.permute.xlu1 %450 }
  0x87   : > { %v249_v29 = vsel %vm248_vm1, %v247_v28, %v246_v25  ;;  %v253_v30 = vmul.f32 %v247_v28, %v221_v26  ;;  %v452_v41 = vrot.slane %v451_v34, 4  ;;  %v1145_v25 = vperm.slane %v1552_v19, 0  ;;  %v259_v28 = vpop.permute.xlu2 %258 }
  0x88   : > { %v252_v31 = vmul.f32 %v249_v29, %v220_v27 }
  0x89   : > { %270 = vst [vmem:[#allocation1 + $0x10] ss:$2 sm:$0xff] %v253_v30  ;;  %v454_v46 = vsel %vm453_vm3, %v452_v41, %v451_v34  ;;  %v458_v52 = vmul.f32 %v452_v41, %v442_v47  ;;  %v784_v41 = vld [vmem:[#allocation2 + $0x8] sm:$0xf] }
  0x8a   : > { %268 = vst [vmem:[#allocation1] ss:$2 sm:$0xff] %v252_v31  ;;  %v457_v50 = vmul.f32 %v454_v46, %v220_v27 }
  0x8c   : > { %v230_v33 = vpop.permute.xlu0 %229 }
  0x8d   : > { %v231_v35 = vrot.slane %v230_v33, 4 }
  0x8e   : > { %v572_v49 = vpop.permute.xlu1 %571 }
  0x8f   : > { %v233_v37 = vsel %vm232_vm2, %v231_v35, %v230_v33  ;;  %v237_v38 = vmul.f32 %v231_v35, %v221_v26  ;;  %v573_v54 = vrot.slane %v572_v49, 4  ;;  %v1147_v26 = vrot.slane %v1146_v20, 4  ;;  %v1812_v29 = vpop.permute.xlu2 %459 }
  0x90   : > { %v236_v39 = vmul.f32 %v233_v37, %v220_v27  ;;  %v273_v40 = vld.sshfl [vmem:[#allocation1 + $0x10] sm:$0xff pattern:$0x75316420] }
  0x91   : > { %v271_v42 = vld.sshfl [vmem:[#allocation1] sm:$0xff pattern:$0x75316420]  ;;  %v272_v43 = vld.sshfl [vmem:[#allocation1 + $0x8] sm:$0xff pattern:$0x75316420]  ;;  %278 = vrot.lane.b32.xlu0 %v273_v40, %s1643_s21  ;;  %v575_v62 = vsel %vm574_vm4, %v573_v54, %v572_v49  ;;  %v579_v4 = vmul.f32 %v573_v54, %v563_v63 }
  0x92   : > { %356 = vst [vmem:[#allocation1] ss:$2 sm:$0xff] %v236_v39  ;;  %274 = vrot.lane.b32.xlu2 %v271_v42, %s1643_s21  ;;  %v578_v0 = vmul.f32 %v575_v62, %v220_v27  ;;  %v1148_v27 = vsel %vm227_vm0, %v1145_v25, %v1147_v26 }
  0x93   : > { %358 = vst [vmem:[#allocation1 + $0x10] ss:$2 sm:$0xff] %v237_v38 }
  0x94   : > { %v265_v35 = vpop.permute.xlu0 %264 }
  0x96   : > { %v263_v31 = vpop.permute.xlu1 %262 }
  0x99   : > { %v360_v56 = vld.sshfl [vmem:[#allocation1 + $0x8] sm:$0xff pattern:$0x75316420]  ;;  %792 = vrot.lane.b32.xlu0 %v791_v51, %s1644_s26  ;;  %v359_v57 = vld.sshfl [vmem:[#allocation1] sm:$0xff pattern:$0x75316420] }
  0x9a   : > { %v361_v58 = vld.sshfl [vmem:[#allocation1 + $0x10] sm:$0xff pattern:$0x75316420]  ;;  %276 = vrot.lane.b32.xlu2 %v272_v43, %s1643_s21  ;;  %362 = vrot.lane.b32.xlu1 %v359_v57, %s1645_s5  ;;  %469 = vst [vmem:[#allocation1] ss:$2 sm:$0xff] %v457_v50 }
  0x9b   : > { %471 = vst [vmem:[#allocation1 + $0x10] ss:$2 sm:$0xff] %v458_v52 }
  0x9e   : > { %v261_v34 = vpop.permute.xlu1 %260 }
  0xa1   : > { %366 = vrot.lane.b32.xlu0 %v361_v58, %s1645_s5  ;;  %v473_v5 = vld.sshfl [vmem:[#allocation1 + $0x8] sm:$0xff pattern:$0x75316420]  ;;  %v472_v6 = vld.sshfl [vmem:[#allocation1] sm:$0xff pattern:$0x75316420] }
  0xa2   : > { %v474_v7 = vld.sshfl [vmem:[#allocation1 + $0x10] sm:$0xff pattern:$0x75316420]  ;;  %911 = vrot.lane.b32.xlu2 %v910_v3, %s1646_s6  ;;  %590 = vst [vmem:[#allocation1] ss:$2 sm:$0xff] %v578_v0 }
  0xa3   : > { %479 = vrot.lane.b32.xlu1 %v474_v7, %s1646_s6  ;;  %592 = vst [vmem:[#allocation1 + $0x10] ss:$2 sm:$0xff] %v579_v4  ;;  %v1022_v3 = vld [vmem:[#allocation2 + $0x8] sm:$0xf] }
  0xa6   : > { %v1821_v37 = vpop.permute.xlu1 %461 }
  0xa9   : > { %477 = vrot.lane.b32.xlu0 %v473_v5, %s1646_s6  ;;  %v593_v11 = vld.sshfl [vmem:[#allocation1] sm:$0xff pattern:$0x75316420]  ;;  %v594_v12 = vld.sshfl [vmem:[#allocation1 + $0x8] sm:$0xff pattern:$0x75316420] }
  0xaa   : > { %364 = vrot.lane.b32.xlu2 %v360_v56, %s1645_s5  ;;  %702 = vst [vmem:[#allocation1] ss:$2 sm:$0xff] %v692_v9  ;;  %v595_v17 = vld.sshfl [vmem:[#allocation1 + $0x10] sm:$0xff pattern:$0x75316420] }
  0xab   : > { %465 = vrot.lane.b32.xlu1 %v1744_v23, %s1640_s29 }
  0xb1   : > { %463 = vrot.lane.b32.xlu0 %v1725_v21, %s1640_s29  ;;  %v703_v47 = vld.sshfl [vmem:[#allocation1] sm:$0xff pattern:$0x75316420]  ;;  %v704_v48 = vld.sshfl [vmem:[#allocation1 + $0x8] sm:$0xff pattern:$0x75316420] }
  0xb2   : > { %475 = vrot.lane.b32.xlu2 %v472_v6, %s1646_s6 }
  0xb3   : > { %693 = vrot.lane.b32.xlu1 %v1708_v10, %s1638_s27 }
  0xb9   : > { %582 = vrot.lane.b32.xlu0 %v1751_v24, %s1647_s9 }
  0xba   : > { %580 = vrot.lane.b32.xlu2 %v1708_v10, %s1647_s9 }
  0xbb   : > { %596 = vrot.lane.b32.xlu1 %v593_v11, %s1644_s26 }
  0xc1   : > { %600 = vrot.lane.b32.xlu0 %v595_v17, %s1644_s26 }
  0xc2   : > { %1030 = vrot.lane.b32.xlu2 %v1029_v18, %s1643_s21  ;;  %v1141_v18 = vld [vmem:[#allocation2 + $0x8] sm:$0xf] }
  0xc3   : > { %695 = vrot.lane.b32.xlu1 %v1751_v24, %s1638_s27 }
  0xc9   : > { %584 = vrot.lane.b32.xlu0 %v1725_v21, %s1647_s9 }
  0xca   : > { %598 = vrot.lane.b32.xlu2 %v594_v12, %s1644_s26 }
  0xcb   : > { %697 = vrot.lane.b32.xlu1 %v1725_v21, %s1638_s27 }
  0xd1   : > { %586 = vrot.lane.b32.xlu0 %v1744_v23, %s1647_s9 }
  0xd2   : > { %1149 = vrot.lane.b32.xlu2 %v1148_v27, %s1645_s5 }
  0xd9   : > { %800 = vrot.lane.b32.xlu0 %v1708_v10, %s1648_s11 }
  0xda   : > { %699 = vrot.lane.b32.xlu2 %v1744_v23, %s1638_s27 }
  0xec   : > { %v275_v30 = vpop.permute.xlu2 %274 }
  0xf4   : > { %v277_v32 = vpop.permute.xlu2 %276 }
  0xf5   : > { %v281_v33 = vsel %vm280_vm5, %v275_v30, %v277_v32 }
  0xf6   : > { %1466 = vmatpush.msk.msra.mxu0 %vm227_vm0, %v281_v33  ;;  %1567 = vmatpush.msk.msra.mxu2 %vm227_vm0, %v281_v33 }
  0xf7   : > { %1467 = vmatmul.msk.f32.vlgmr.msra.gmra.mxu0 %vm283_vm6, %v259_v28  ;;  %1469 = vmatmul.msk.f32.vlgmr.msra.gmra.mxu2 %vm283_vm6, %v263_v31 }
  0xfc   : > { %v912_v36 = vpop.permute.xlu2 %911 }
  0xfd   : > { %v913_v52 = vrot.slane %v912_v36, 4 }
  0xff   : > { %1470 = vmatmul.msk.f32.gmra.mxu2 %vm283_vm6, %v265_v35  ;;  %1468 = vmatmul.msk.f32.gmra.mxu0 %vm283_vm6, %v261_v34  ;;  %v914_v57 = vsel %vm481_vm9, %v913_v52, %v912_v36  ;;  %v918_v59 = vmul.f32 %v913_v52, %v903_v53 }
 0x100   : > { %v917_v61 = vmul.f32 %v914_v57, %v1737_v22 }
 0x103   : > { %v279_v38 = vpop.permute.xlu0 %278 }
 0x104   : > { %v282_v39 = vsel %vm280_vm5, %v277_v32, %v279_v38  ;;  %v365_v40 = vpop.permute.xlu2 %364 }
 0x105   : > { %1471 = vmatpush.msk.msra.mxu1 %vm227_vm0, %v282_v39  ;;  %1568 = vmatpush.msk.msra.mxu3 %vm227_vm0, %v282_v39 }
 0x106   : > { %1472 = vmatmul.msk.f32.vlgmr.msra.gmra.mxu1 %vm283_vm6, %v259_v28  ;;  %1474 = vmatmul.msk.f32.vlgmr.msra.gmra.mxu3 %vm283_vm6, %v263_v31 }
 0x10b   : > { %v793_v42 = vpop.permute.xlu0 %792 }
 0x10c   : > { %v794_v43 = vrot.slane %v793_v42, 4  ;;  %v363_v44 = vpop.permute.xlu1 %362  ;;  %v476_v45 = vpop.permute.xlu2 %475 }
 0x10d   : > { %v369_v46 = vsel %vm368_vm7, %v363_v44, %v365_v40 }
 0x10e   : > { %v795_v49 = vsel %vm602_vm8, %v794_v43, %v793_v42  ;;  %v799_v50 = vmul.f32 %v794_v43, %v784_v41  ;;  %1475 = vmatmul.msk.f32.gmra.mxu3 %vm283_vm6, %v265_v35  ;;  %1476 = vmatpush.msk.msrb.mxu2 %vm227_vm0, %v369_v46 }
 0x10f   : > { %v798_v51 = vmul.f32 %v795_v49, %v1737_v22  ;;  %1477 = vmatmul.msk.f32.vlgmr.msrb.gmra.mxu2 %vm283_vm6, %v1708_v10  ;;  %1473 = vmatmul.msk.f32.gmra.mxu1 %vm283_vm6, %v261_v34 }
 0x110   : > { %812 = vst [vmem:[#allocation1 + $0x10] ss:$2 sm:$0xff] %v799_v50 }
 0x111   : > { %810 = vst [vmem:[#allocation1] ss:$2 sm:$0xff] %v798_v51 }
 0x113   : > { %v367_v54 = vpop.permute.xlu0 %366 }
 0x114   : > { %v370_v55 = vsel %vm368_vm7, %v365_v40, %v367_v54  ;;  %v1837_v56 = vpop.permute.xlu2 %580 }
 0x115   : > { %v480_v58 = vpop.permute.xlu1 %479  ;;  %1481 = vmatpush.msk.msrb.mxu3 %vm227_vm0, %v370_v55 }
 0x116   : > { %1482 = vmatmul.msk.f32.vlgmr.msrb.gmra.mxu3 %vm283_vm6, %v1708_v10 }
 0x117   : > { %1478 = vmatmul.msk.f32.gmra.mxu2 %vm283_vm6, %v1751_v24  ;;  %v815_v60 = vld.sshfl [vmem:[#allocation1 + $0x10] sm:$0xff pattern:$0x75316420] }
 0x118   : > { %931 = vst [vmem:[#allocation1 + $0x10] ss:$2 sm:$0xff] %v918_v59  ;;  %820 = vrot.lane.b32.xlu1 %v815_v60, %s1642_s4  ;;  %v814_v62 = vld.sshfl [vmem:[#allocation1 + $0x8] sm:$0xff pattern:$0x75316420] }
 0x119   : > { %818 = vrot.lane.b32.xlu0 %v814_v62, %s1642_s4  ;;  %v813_v63 = vld.sshfl [vmem:[#allocation1] sm:$0xff pattern:$0x75316420] }
 0x11a   : > { %816 = vrot.lane.b32.xlu2 %v813_v63, %s1642_s4  ;;  %929 = vst [vmem:[#allocation1] ss:$2 sm:$0xff] %v917_v61  ;;  %s1649_s4 = smov 104  }
 0x11b   : > { %v478_v0 = vpop.permute.xlu0 %477 }
 0x11c   : > { %v482_v1 = vsel %vm481_vm9, %v476_v45, %v478_v0  ;;  %v483_v2 = vsel %vm481_vm9, %v478_v0, %v480_v58  ;;  %v1031_v4 = vpop.permute.xlu2 %1030 }
 0x11d   : > { %v466_v5 = vpop.permute.xlu1 %465  ;;  %1487 = vmatpush.msk.msrb.mxu0 %vm227_vm0, %v482_v1  ;;  %1492 = vmatpush.msk.msrb.mxu1 %vm227_vm0, %v483_v2  ;;  %v1032_v6 = vrot.slane %v1031_v4, 4 }
 0x11e   : > { %1483 = vmatmul.msk.f32.gmra.mxu3 %vm283_vm6, %v1751_v24  ;;  %1488 = vmatmul.msk.f32.vlgmr.msrb.gmra.mxu0 %vm283_vm6, %v1812_v29 }
 0x11f   : > { %1493 = vmatmul.msk.f32.vlgmr.msrb.gmra.mxu1 %vm283_vm6, %v1812_v29  ;;  %1479 = vmatmul.msk.f32.gmra.mxu2 %vm283_vm6, %v1725_v21  ;;  %v934_v7 = vld.sshfl [vmem:[#allocation1 + $0x10] sm:$0xff pattern:$0x75316420]  ;;  %v1033_v8 = vsel %vm280_vm5, %v1032_v6, %v1031_v4  ;;  %v1037_v9 = vmul.f32 %v1032_v6, %v1022_v3 }
 0x120   : > { %802 = vrot.lane.b32.xlu1 %v1751_v24, %s1648_s11  ;;  %v1036_v11 = vmul.f32 %v1033_v8, %v1737_v22  ;;  %1509 = vmatpush.msk.msra.mxu0 %vm227_vm0, %v703_v47 }
 0x121   : > { %939 = vrot.lane.b32.xlu0 %v934_v7, %s1639_s28  ;;  %1050 = vst [vmem:[#allocation1 + $0x10] ss:$2 sm:$0xff] %v1037_v9  ;;  %1514 = vmatpush.msk.msra.mxu1 %vm227_vm0, %v704_v48  ;;  %v932_v12 = vld.sshfl [vmem:[#allocation1] sm:$0xff pattern:$0x75316420] }
 0x122   : > { %919 = vrot.lane.b32.xlu2 %v1708_v10, %s1649_s4  ;;  %v933_v13 = vld.sshfl [vmem:[#allocation1 + $0x8] sm:$0xff pattern:$0x75316420] }
 0x123   : > { %v464_v14 = vpop.permute.xlu0 %463  ;;  %1048 = vst [vmem:[#allocation1] ss:$2 sm:$0xff] %v1036_v11 }
 0x124   : > { %v599_v15 = vpop.permute.xlu2 %598 }
 0x125   : > { %v694_v16 = vpop.permute.xlu1 %693 }
 0x126   : > { %1484 = vmatmul.msk.f32.gmra.mxu3 %vm283_vm6, %v1725_v21  ;;  %1489 = vmatmul.msk.f32.gmra.mxu0 %vm283_vm6, %v1821_v37 }
 0x127   : > { %1494 = vmatmul.msk.f32.gmra.mxu1 %vm283_vm6, %v1821_v37  ;;  %1480 = vmatmul.msk.f32.gmra.mxu2 %vm283_vm6, %v1744_v23 }
 0x128   : > { %935 = vrot.lane.b32.xlu1 %v932_v12, %s1639_s28  ;;  %v1053_v30 = vld.sshfl [vmem:[#allocation1 + $0x10] sm:$0xff pattern:$0x75316420] }
 0x129   : > { %804 = vrot.lane.b32.xlu0 %v1725_v21, %s1648_s11 }
 0x12a   : > { %937 = vrot.lane.b32.xlu2 %v933_v13, %s1639_s28  ;;  %v1051_v31 = vld.sshfl [vmem:[#allocation1] sm:$0xff pattern:$0x75316420]  ;;  %v1052_v32 = vld.sshfl [vmem:[#allocation1 + $0x8] sm:$0xff pattern:$0x75316420] }
 0x12b   : > { %v583_v17 = vpop.permute.xlu0 %582  ;;  %s1650_s28 = smov 100  }
 0x12c   : > { %v1150_v19 = vpop.permute.xlu2 %1149 }
 0x12d   : > { %v597_v20 = vpop.permute.xlu1 %596  ;;  %v1151_v25 = vrot.slane %v1150_v19, 4 }
 0x12e   : > { %v603_v26 = vsel %vm602_vm8, %v597_v20, %v599_v15  ;;  %1485 = vmatmul.msk.f32.gmra.mxu3 %vm283_vm6, %v1744_v23  ;;  %1490 = vmatmul.msk.f32.gmra.mxu0 %vm283_vm6, %v464_v14 }
 0x12f   : > { %1495 = vmatmul.msk.f32.gmra.mxu1 %vm283_vm6, %v464_v14  ;;  %1498 = vmatpush.msk.msra.mxu2 %vm227_vm0, %v603_v26  ;;  %v1152_v27 = vsel %vm368_vm7, %v1151_v25, %v1150_v19  ;;  %v1156_v28 = vmul.f32 %v1151_v25, %v1141_v18 }
 0x130   : > { %1499 = vmatmul.msk.f32.vlgmr.msra.gmra.mxu2 %vm283_vm6, %v1837_v56  ;;  %921 = vrot.lane.b32.xlu1 %v1751_v24, %s1649_s4  ;;  %v1155_v29 = vmul.f32 %v1152_v27, %v1737_v22 }
 0x131   : > { %923 = vrot.lane.b32.xlu0 %v1725_v21, %s1649_s4  ;;  %1169 = vst [vmem:[#allocation1 + $0x10] ss:$2 sm:$0xff] %v1156_v28 }
 0x132   : > { %806 = vrot.lane.b32.xlu2 %v1744_v23, %s1648_s11  ;;  %1167 = vst [vmem:[#allocation1] ss:$2 sm:$0xff] %v1155_v29 }
 0x133   : > { %v601_v33 = vpop.permute.xlu0 %600 }
 0x134   : > { %v604_v34 = vsel %vm602_vm8, %v599_v15, %v601_v33  ;;  %v700_v41 = vpop.permute.xlu2 %699 }
 0x135   : > { %1503 = vmatpush.msk.msra.mxu3 %vm227_vm0, %v604_v34  ;;  %v696_v36 = vpop.permute.xlu1 %695 }
 0x136   : > { %1491 = vmatmul.msk.f32.gmra.mxu0 %vm283_vm6, %v466_v5  ;;  %1504 = vmatmul.msk.f32.vlgmr.msra.gmra.mxu3 %vm283_vm6, %v1837_v56 }
 0x137   : > { %1496 = vmatmul.msk.f32.gmra.mxu1 %vm283_vm6, %v466_v5 }
 0x138   : > { %1500 = vmatmul.msk.f32.gmra.mxu2 %vm283_vm6, %v583_v17  ;;  %925 = vrot.lane.b32.xlu1 %v1744_v23, %s1649_s4  ;;  %v1172_v39 = vld.sshfl [vmem:[#allocation1 + $0x10] sm:$0xff pattern:$0x75316420] }
 0x139   : > { %1058 = vrot.lane.b32.xlu0 %v1053_v30, %s1638_s27  ;;  %v1170_v35 = vld.sshfl [vmem:[#allocation1] sm:$0xff pattern:$0x75316420]  ;;  %v1171_v38 = vld.sshfl [vmem:[#allocation1 + $0x8] sm:$0xff pattern:$0x75316420] }
 0x13a   : > { %1038 = vrot.lane.b32.xlu2 %v1708_v10, %s1650_s28 }
 0x13b   : > { %v585_v22 = vpop.permute.xlu0 %584 }
 0x13d   : > { %v698_v40 = vpop.permute.xlu1 %697 }
 0x13e   : > { %1505 = vmatmul.msk.f32.gmra.mxu3 %vm283_vm6, %v583_v17  ;;  %1510 = vmatmul.msk.f32.vlgmr.msra.gmra.mxu0 %vm283_vm6, %v694_v16 }
 0x13f   : > { %1515 = vmatmul.msk.f32.vlgmr.msra.gmra.mxu1 %vm283_vm6, %v694_v16 }
 0x140   : > { %1501 = vmatmul.msk.f32.gmra.mxu2 %vm283_vm6, %v585_v22  ;;  %1054 = vrot.lane.b32.xlu1 %v1051_v31, %s1638_s27 }
 0x141   : > { %1173 = vrot.lane.b32.xlu0 %v1170_v35, %s1641_s30 }
 0x142   : > { %1056 = vrot.lane.b32.xlu2 %v1052_v32, %s1638_s27  ;;  %s1651_s27 = smov 96  }
 0x143   : > { %v587_v37 = vpop.permute.xlu0 %586 }
 0x146   : > { %1506 = vmatmul.msk.f32.gmra.mxu3 %vm283_vm6, %v585_v22  ;;  %1511 = vmatmul.msk.f32.gmra.mxu0 %vm283_vm6, %v696_v36 }
 0x147   : > { %1516 = vmatmul.msk.f32.gmra.mxu1 %vm283_vm6, %v696_v36 }
 0x148   : > { %1502 = vmatmul.msk.f32.gmra.mxu2 %vm283_vm6, %v587_v37  ;;  %1175 = vrot.lane.b32.xlu1 %v1171_v38, %s1641_s30 }
 0x149   : > { %1040 = vrot.lane.b32.xlu0 %v1751_v24, %s1650_s28 }
 0x14a   : > { %1177 = vrot.lane.b32.xlu2 %v1172_v39, %s1641_s30  ;;  %s1566_s30 = sshll.u32 %s2092_s12, 6 }
 0x14b   : > { %v801_v44 = vpop.permute.xlu0 %800  ;;  %s212_s18 = scalar_lea.vmem %s2086_s3, %s1566_s30 }
 0x14e   : > { %1507 = vmatmul.msk.f32.gmra.mxu3 %vm283_vm6, %v587_v37  ;;  %1512 = vmatmul.msk.f32.gmra.mxu0 %vm283_vm6, %v698_v40 }
 0x14f   : > { %1517 = vmatmul.msk.f32.gmra.mxu1 %vm283_vm6, %v698_v40 }
 0x150   : > { %1157 = vrot.lane.b32.xlu1 %v1708_v10, %s1651_s27 }
 0x151   : > { %1159 = vrot.lane.b32.xlu0 %v1751_v24, %s1651_s27 }
 0x152   : > { %1042 = vrot.lane.b32.xlu2 %v1725_v21, %s1650_s28 }
 0x156   : > { %1513 = vmatmul.msk.f32.gmra.mxu0 %vm283_vm6, %v700_v41 }
 0x157   : > { %1518 = vmatmul.msk.f32.gmra.mxu1 %vm283_vm6, %v700_v41 }
 0x158   : > { %1044 = vrot.lane.b32.xlu1 %v1744_v23, %s1650_s28 }
 0x159   : > { %1163 = vrot.lane.b32.xlu0 %v1744_v23, %s1651_s27 }
 0x15a   : > { %1161 = vrot.lane.b32.xlu2 %v1725_v21, %s1651_s27 }
 0x174   : > { %v817_v42 = vpop.permute.xlu2 %816  ;;  %v313_v24 = vpop.f32.mrf.mxu0 }
 0x17a   : > { %v319_v43 = vpop.f32.mrf.mxu2 }
 0x17c   : > { %v920_v10 = vpop.permute.xlu2 %919  ;;  %v316_v21 = vpop.f32.mrf.mxu0 }
 0x182   : > { %v322_v47 = vpop.f32.mrf.mxu2 }
 0x183   : > { %v342_v45 = vpop.f32.mrf.mxu1 }
 0x184   : > { %v938_v49 = vpop.permute.xlu2 %937 }
 0x189   : > { %v348_v46 = vpop.f32.mrf.mxu3 }
 0x18a   : > { %v821_v48 = vpop.permute.xlu1 %820 }
 0x18b   : > { %v819_v50 = vpop.permute.xlu0 %818 }
 0x18c   : > { %v822_v51 = vsel %vm574_vm4, %v817_v42, %v819_v50  ;;  %v823_v52 = vsel %vm574_vm4, %v819_v50, %v821_v48  ;;  %v345_v53 = vpop.f32.mrf.mxu1  ;;  %v807_v59 = vpop.permute.xlu2 %806 }
 0x18d   : > { %1520 = vmatpush.msk.msrb.mxu2 %vm227_vm0, %v822_v51  ;;  %1525 = vmatpush.msk.msrb.mxu3 %vm227_vm0, %v823_v52 }
 0x18e   : > { %1521 = vmatmul.msk.f32.vlgmr.msrb.gmra.mxu2 %vm283_vm6, %v801_v44  ;;  %1526 = vmatmul.msk.f32.vlgmr.msrb.gmra.mxu3 %vm283_vm6, %v801_v44 }
 0x191   : > { %v351_v23 = vpop.f32.mrf.mxu3 }
 0x192   : > { %v400_v54 = vpop.f32.mrf.mxu2  ;;  %v803_v55 = vpop.permute.xlu1 %802 }
 0x193   : > { %v401_v56 = vadd.f32 %v400_v54, %v313_v24  ;;  %v940_v57 = vpop.permute.xlu0 %939 }
 0x194   : > { %v942_v58 = vsel %vm453_vm3, %v938_v49, %v940_v57  ;;  %v1039_v7 = vpop.permute.xlu2 %1038 }
 0x195   : > { %1536 = vmatpush.msk.msrb.mxu1 %vm227_vm0, %v942_v58 }
 0x196   : > { %1522 = vmatmul.msk.f32.gmra.mxu2 %vm283_vm6, %v803_v55  ;;  %1527 = vmatmul.msk.f32.gmra.mxu3 %vm283_vm6, %v803_v55 }
 0x197   : > { %1537 = vmatmul.msk.f32.vlgmr.msrb.gmra.mxu1 %vm283_vm6, %v920_v10 }
 0x199   : > { %v429_v60 = vpop.f32.mrf.mxu3 }
 0x19a   : > { %v430_v61 = vadd.f32 %v429_v60, %v342_v45  ;;  %v403_v62 = vpop.f32.mrf.mxu2  ;;  %v936_v63 = vpop.permute.xlu1 %935 }
 0x19b   : > { %v404_v0 = vadd.f32 %v403_v62, %v316_v21  ;;  %v941_v1 = vsel %vm453_vm3, %v936_v63, %v938_v49  ;;  %v513_v2 = vpop.f32.mrf.mxu0  ;;  %v805_v3 = vpop.permute.xlu0 %804 }
 0x19c   : > { %v1950_v4 = vadd.f32 %v513_v2, %v401_v56  ;;  %v542_v5 = vpop.f32.mrf.mxu1  ;;  %1531 = vmatpush.msk.msrb.mxu0 %vm227_vm0, %v941_v1  ;;  %v1057_v19 = vpop.permute.xlu2 %1056 }
 0x19d   : > { %v1953_v6 = vadd.f32 %v542_v5, %v430_v61  ;;  %1532 = vmatmul.msk.f32.vlgmr.msrb.gmra.mxu0 %vm283_vm6, %v920_v10 }
 0x19e   : > { %1523 = vmatmul.msk.f32.gmra.mxu2 %vm283_vm6, %v805_v3  ;;  %1528 = vmatmul.msk.f32.gmra.mxu3 %vm283_vm6, %v805_v3 }
 0x1a1   : > { %v432_v8 = vpop.f32.mrf.mxu3 }
 0x1a2   : > { %v433_v9 = vadd.f32 %v432_v8, %v345_v53  ;;  %v406_v11 = vpop.f32.mrf.mxu2  ;;  %v922_v12 = vpop.permute.xlu1 %921 }
 0x1a3   : > { %v407_v13 = vadd.f32 %v406_v11, %v319_v43  ;;  %v516_v14 = vpop.f32.mrf.mxu0  ;;  %v924_v15 = vpop.permute.xlu0 %923  ;;  %1538 = vmatmul.msk.f32.gmra.mxu1 %vm283_vm6, %v922_v12 }
 0x1a4   : > { %v1959_v16 = vadd.f32 %v516_v14, %v404_v0  ;;  %v545_v17 = vpop.f32.mrf.mxu1  ;;  %v1178_v43 = vpop.permute.xlu2 %1177 }
 0x1a5   : > { %v1961_v18 = vadd.f32 %v545_v17, %v433_v9  ;;  %1533 = vmatmul.msk.f32.gmra.mxu0 %vm283_vm6, %v922_v12 }
 0x1a6   : > { %1524 = vmatmul.msk.f32.gmra.mxu2 %vm283_vm6, %v807_v59  ;;  %1529 = vmatmul.msk.f32.gmra.mxu3 %vm283_vm6, %v807_v59 }
 0x1a9   : > { %v435_v20 = vpop.f32.mrf.mxu3 }
 0x1aa   : > { %v436_v25 = vadd.f32 %v435_v20, %v348_v46  ;;  %v409_v26 = vpop.f32.mrf.mxu2  ;;  %v926_v27 = vpop.permute.xlu1 %925 }
 0x1ab   : > { %v410_v28 = vadd.f32 %v409_v26, %v322_v47  ;;  %v519_v29 = vpop.f32.mrf.mxu0  ;;  %v1059_v30 = vpop.permute.xlu0 %1058  ;;  %1539 = vmatmul.msk.f32.gmra.mxu1 %vm283_vm6, %v924_v15 }
 0x1ac   : > { %v1967_v31 = vadd.f32 %v519_v29, %v407_v13  ;;  %v548_v32 = vpop.f32.mrf.mxu1  ;;  %v1061_v33 = vsel %vm248_vm1, %v1057_v19, %v1059_v30  ;;  %v1043_v47 = vpop.permute.xlu2 %1042 }
 0x1ad   : > { %v1970_v34 = vadd.f32 %v548_v32, %v436_v25  ;;  %1534 = vmatmul.msk.f32.gmra.mxu0 %vm283_vm6, %v924_v15  ;;  %1547 = vmatpush.msk.msra.mxu3 %vm227_vm0, %v1061_v33 }
 0x1ae   : > { %1548 = vmatmul.msk.f32.vlgmr.msra.gmra.mxu3 %vm283_vm6, %v1039_v7 }
 0x1b1   : > { %v438_v22 = vpop.f32.mrf.mxu3 }
 0x1b2   : > { %v439_v35 = vadd.f32 %v438_v22, %v351_v23  ;;  %v1055_v36 = vpop.permute.xlu1 %1054 }
 0x1b3   : > { %v1060_v37 = vsel %vm248_vm1, %v1055_v36, %v1057_v19  ;;  %v522_v38 = vpop.f32.mrf.mxu0  ;;  %1540 = vmatmul.msk.f32.gmra.mxu1 %vm283_vm6, %v926_v27  ;;  %v1174_v41 = vpop.permute.xlu0 %1173 }
 0x1b4   : > { %v1977_v39 = vadd.f32 %v522_v38, %v410_v28  ;;  %v551_v40 = vpop.f32.mrf.mxu1  ;;  %1542 = vmatpush.msk.msra.mxu2 %vm227_vm0, %v1060_v37  ;;  %v1162_v50 = vpop.permute.xlu2 %1161 }
 0x1b5   : > { %v1980_v42 = vadd.f32 %v551_v40, %v439_v35  ;;  %1535 = vmatmul.msk.f32.gmra.mxu0 %vm283_vm6, %v926_v27  ;;  %1543 = vmatmul.msk.f32.vlgmr.msra.gmra.mxu2 %vm283_vm6, %v1039_v7  ;;  %v634_v21 = vpop.f32.mrf.mxu2 }
 0x1b6   : > { %v675_v26 = vadd.f32 %v634_v21, %v1950_v4 }
 0x1b9   : > { %v663_v52 = vpop.f32.mrf.mxu3 }
 0x1ba   : > { %v1176_v10 = vpop.permute.xlu1 %1175  ;;  %v676_v25 = vadd.f32 %v663_v52, %v1953_v6 }
 0x1bb   : > { %v1179_v44 = vsel %vm232_vm2, %v1174_v41, %v1176_v10  ;;  %v1180_v24 = vsel %vm232_vm2, %v1176_v10, %v1178_v43  ;;  %v1041_v45 = vpop.permute.xlu0 %1040  ;;  %v734_v23 = vpop.f32.mrf.mxu0 }
 0x1bc   : > { %1553 = vmatpush.msk.msra.mxu0 %vm227_vm0, %v1179_v44  ;;  %1558 = vmatpush.msk.msra.mxu1 %vm227_vm0, %v1180_v24  ;;  %v763_v55 = vpop.f32.mrf.mxu1  ;;  %v775_v33 = vadd.f32 %v734_v23, %v675_v26 }
 0x1bd   : > { %1549 = vmatmul.msk.f32.gmra.mxu3 %vm283_vm6, %v1041_v45  ;;  %1544 = vmatmul.msk.f32.gmra.mxu2 %vm283_vm6, %v1041_v45  ;;  %v637_v54 = vpop.f32.mrf.mxu2  ;;  %v776_v27 = vadd.f32 %v763_v55, %v676_v25 }
 0x1be   : > { %v677_v36 = vadd.f32 %v637_v54, %v1959_v16 }
 0x1c1   : > { %v666_v53 = vpop.f32.mrf.mxu3 }
 0x1c2   : > { %v1158_v46 = vpop.permute.xlu1 %1157  ;;  %v678_v37 = vadd.f32 %v666_v53, %v1961_v18 }
 0x1c3   : > { %1554 = vmatmul.msk.f32.vlgmr.msra.gmra.mxu0 %vm283_vm6, %v1158_v46  ;;  %1559 = vmatmul.msk.f32.vlgmr.msra.gmra.mxu1 %vm283_vm6, %v1158_v46  ;;  %v1160_v48 = vpop.permute.xlu0 %1159  ;;  %v737_v56 = vpop.f32.mrf.mxu0 }
 0x1c4   : > { %v766_v59 = vpop.f32.mrf.mxu1  ;;  %v777_v10 = vadd.f32 %v737_v56, %v677_v36 }
 0x1c5   : > { %1550 = vmatmul.msk.f32.gmra.mxu3 %vm283_vm6, %v1043_v47  ;;  %1545 = vmatmul.msk.f32.gmra.mxu2 %vm283_vm6, %v1043_v47  ;;  %v640_v58 = vpop.f32.mrf.mxu2  ;;  %v778_v45 = vadd.f32 %v766_v59, %v678_v37 }
 0x1c6   : > { %v679_v53 = vadd.f32 %v640_v58, %v1967_v31 }
 0x1c9   : > { %v669_v57 = vpop.f32.mrf.mxu3 }
 0x1ca   : > { %v1045_v49 = vpop.permute.xlu1 %1044 }
 0x1cb   : > { %1555 = vmatmul.msk.f32.gmra.mxu0 %vm283_vm6, %v1160_v48  ;;  %1560 = vmatmul.msk.f32.gmra.mxu1 %vm283_vm6, %v1160_v48  ;;  %v1164_v51 = vpop.permute.xlu0 %1163  ;;  %v740_v60 = vpop.f32.mrf.mxu0 }
 0x1cc   : > { %v769_v63 = vpop.f32.mrf.mxu1 }
 0x1cd   : > { %1551 = vmatmul.msk.f32.gmra.mxu3 %vm283_vm6, %v1045_v49  ;;  %1546 = vmatmul.msk.f32.gmra.mxu2 %vm283_vm6, %v1045_v49  ;;  %v2004_v62 = vpop.f32.mrf.mxu2 }
 0x1ce   : > { %v681_v26 = vadd.f32 %v2004_v62, %v1977_v39 }
 0x1d1   : > { %v2002_v61 = vpop.f32.mrf.mxu3 }
 0x1d2   : > { %v682_v58 = vadd.f32 %v2002_v61, %v1980_v42 }
 0x1d3   : > { %1556 = vmatmul.msk.f32.gmra.mxu0 %vm283_vm6, %v1162_v50  ;;  %1561 = vmatmul.msk.f32.gmra.mxu1 %vm283_vm6, %v1162_v50  ;;  %v2006_v2 = vpop.f32.mrf.mxu0 }
 0x1d4   : > { %v2008_v3 = vpop.f32.mrf.mxu1 }
 0x1db   : > { %1557 = vmatmul.msk.f32.gmra.mxu0 %vm283_vm6, %v1164_v51  ;;  %1562 = vmatmul.msk.f32.gmra.mxu1 %vm283_vm6, %v1164_v51  ;;  %v680_v51 = vadd.f32 %v669_v57, %v1970_v34 }
 0x211   : > { %v882_v0 = vpop.f32.mrf.mxu3  ;;  %v853_v1 = vpop.f32.mrf.mxu2 }
 0x212   : > { %v895_v22 = vadd.f32 %v882_v0, %v776_v27  ;;  %v894_v35 = vadd.f32 %v853_v1, %v775_v33  ;;  %v780_v0 = vadd.f32 %v769_v63, %v680_v51  ;;  %v779_v1 = vadd.f32 %v740_v60, %v679_v53 }
 0x213   : > { %v782_v33 = vadd.f32 %v2008_v3, %v682_v58 }
 0x214   : > { %v1001_v9 = vpop.f32.mrf.mxu1 }
 0x215   : > { %v1014_v38 = vadd.f32 %v1001_v9, %v895_v22 }
 0x219   : > { %v885_v5 = vpop.f32.mrf.mxu3  ;;  %v856_v8 = vpop.f32.mrf.mxu2 }
 0x21a   : > { %v972_v7 = vpop.f32.mrf.mxu0  ;;  %v896_v48 = vadd.f32 %v856_v8, %v777_v10  ;;  %v897_v49 = vadd.f32 %v885_v5, %v778_v45 }
 0x21b   : > { %v1013_v40 = vadd.f32 %v972_v7, %v894_v35 }
 0x220   : > { %v1004_v12 = vpop.f32.mrf.mxu1 }
 0x221   : > { %v888_v11 = vpop.f32.mrf.mxu3  ;;  %v859_v14 = vpop.f32.mrf.mxu2  ;;  %v1016_v52 = vadd.f32 %v1004_v12, %v897_v49 }
 0x222   : > { %v975_v13 = vpop.f32.mrf.mxu0  ;;  %v898_v34 = vadd.f32 %v859_v14, %v779_v1  ;;  %v899_v57 = vadd.f32 %v888_v11, %v780_v0 }
 0x223   : > { %v1015_v21 = vadd.f32 %v975_v13, %v896_v48 }
 0x228   : > { %v1007_v17 = vpop.f32.mrf.mxu1 }
 0x229   : > { %v2010_v15 = vpop.f32.mrf.mxu3  ;;  %v2012_v20 = vpop.f32.mrf.mxu2  ;;  %v1018_v13 = vadd.f32 %v1007_v17, %v899_v57 }
 0x22a   : > { %v978_v19 = vpop.f32.mrf.mxu0 }
 0x22b   : > { %v1017_v63 = vadd.f32 %v978_v19, %v898_v34  ;;  %v901_v19 = vadd.f32 %v2010_v15, %v782_v33 }
 0x230   : > { %v2016_v30 = vpop.f32.mrf.mxu1 }
 0x231   : > { %v1120_v28 = vpop.f32.mrf.mxu3  ;;  %v1020_v35 = vadd.f32 %v2016_v30, %v901_v19 }
 0x232   : > { %v2018_v32 = vpop.f32.mrf.mxu0  ;;  %v1133_v41 = vadd.f32 %v1120_v28, %v1014_v38 }
 0x238   : > { %v1091_v29 = vpop.f32.mrf.mxu2 }
 0x239   : > { %v1132_v6 = vadd.f32 %v1091_v29, %v1013_v40  ;;  %v781_v29 = vadd.f32 %v2006_v2, %v681_v26 }
 0x23b   : > { %v900_v17 = vadd.f32 %v2012_v20, %v781_v29 }
 0x23d   : > { %v1019_v36 = vadd.f32 %v2018_v32, %v900_v17 }
 0x240   : > { %v1123_v43 = vpop.f32.mrf.mxu3  ;;  %v1094_v4 = vpop.f32.mrf.mxu2 }
 0x241   : > { %v1210_v44 = vpop.f32.mrf.mxu0  ;;  %v1239_v24 = vpop.f32.mrf.mxu1  ;;  %v1135_v54 = vadd.f32 %v1123_v43, %v1016_v52  ;;  %v1134_v55 = vadd.f32 %v1094_v4, %v1015_v21 }
 0x242   : > { %v2022_v46 = vadd.f32 %v1210_v44, %v1132_v6  ;;  %v2024_v47 = vadd.f32 %v1239_v24, %v1133_v41  ;;  %v1652_v24 = vmov 0  }
 0x243   : > { %1609 = vset.pattern.permute.xlu2 %v1652_v24  ;;  %1610 = vset.pattern.permute.xlu0 %v1652_v24 }
 0x244   : > { %v1259_v16 = vadd.f32 %v2024_v47, %v2022_v46  ;;  %v1271_v18 = vmul.f32 %v2022_v46, %v2022_v46  ;;  %v1272_v50 = vmul.f32 %v2024_v47, %v2024_v47 }
 0x246   : > { %1260 = vadd.xlane.f32.xlu1 %v1259_v16  ;;  %v1279_v23 = vadd.f32 %v1272_v50, %v1271_v18 }
 0x248   : > { %1280 = vadd.xlane.f32.xlu2 %v1279_v23  ;;  %v1126_v8 = vpop.f32.mrf.mxu3  ;;  %v1097_v9 = vpop.f32.mrf.mxu2 }
 0x249   : > { %v1213_v56 = vpop.f32.mrf.mxu0  ;;  %v1242_v59 = vpop.f32.mrf.mxu1  ;;  %v1137_v14 = vadd.f32 %v1126_v8, %v1018_v13  ;;  %v1136_v11 = vadd.f32 %v1097_v9, %v1017_v63 }
 0x24a   : > { %v2034_v5 = vadd.f32 %v1213_v56, %v1134_v55  ;;  %v2036_v7 = vadd.f32 %v1242_v59, %v1135_v54 }
 0x24c   : > { %v1273_v12 = vmul.f32 %v2034_v5, %v2034_v5  ;;  %v1274_v31 = vmul.f32 %v2036_v7, %v2036_v7  ;;  %v1262_v25 = vadd.f32 %v2036_v7, %v2034_v5 }
 0x24e   : > { %v1282_v60 = vadd.f32 %v1274_v31, %v1273_v12 }
 0x250   : > { %1283 = vadd.xlane.f32.xlu1 %v1282_v60  ;;  %1263 = vadd.xlane.f32.xlu2 %v1262_v25  ;;  %v1129_v62 = vpop.f32.mrf.mxu3  ;;  %v1100_v22 = vpop.f32.mrf.mxu2 }
 0x251   : > { %v1216_v27 = vpop.f32.mrf.mxu0  ;;  %v1245_v28 = vpop.f32.mrf.mxu1  ;;  %v1139_v2 = vadd.f32 %v1129_v62, %v1020_v35  ;;  %v1138_v3 = vadd.f32 %v1100_v22, %v1019_v36 }
 0x252   : > { %v2050_v42 = vadd.f32 %v1216_v27, %v1136_v11  ;;  %v2052_v61 = vadd.f32 %v1245_v28, %v1137_v14 }
 0x254   : > { %v1265_v39 = vadd.f32 %v2052_v61, %v2050_v42  ;;  %v1275_v37 = vmul.f32 %v2050_v42, %v2050_v42  ;;  %v1276_v20 = vmul.f32 %v2052_v61, %v2052_v61 }
 0x256   : > { %1266 = vadd.xlane.f32.xlu0 %v1265_v39  ;;  %v1285_v6 = vadd.f32 %v1276_v20, %v1275_v37 }
 0x259   : > { %v1219_v38 = vpop.f32.mrf.mxu0  ;;  %v1248_v15 = vpop.f32.mrf.mxu1 }
 0x25a   : > { %v1257_v40 = vadd.f32 %v1219_v38, %v1138_v3  ;;  %v1258_v41 = vadd.f32 %v1248_v15, %v1139_v2 }
 0x25c   : > { %v1268_v43 = vadd.f32 %v1258_v41, %v1257_v40  ;;  %v1277_v4 = vmul.f32 %v1257_v40, %v1257_v40  ;;  %v1278_v10 = vmul.f32 %v1258_v41, %v1258_v41 }
 0x25e   : > { %1286 = vadd.xlane.f32.xlu0 %v1285_v6  ;;  %1269 = vadd.xlane.f32.xlu2 %v1268_v43  ;;  %v1288_v30 = vadd.f32 %v1278_v10, %v1277_v4 }
 0x260   : > { %1289 = vadd.xlane.f32.xlu1 %v1288_v30 }
 0x2b9   : > { %v1261_v44 = vpop.xlane.xlu1 %1260 }
 0x2bb   : > { %v1281_v32 = vpop.xlane.xlu2 %1280 }
 0x2c3   : > { %v1264_v45 = vpop.xlane.xlu2 %1263  ;;  %v1284_v49 = vpop.xlane.xlu1 %1283 }
 0x2c4   : > { %v1291_v16 = vadd.f32 %v1264_v45, %v1261_v44  ;;  %v1294_v18 = vadd.f32 %v1284_v49, %v1281_v32 }
 0x2c9   : > { %v1267_v48 = vpop.xlane.xlu0 %1266 }
 0x2ca   : > { %v1292_v50 = vadd.f32 %v1291_v16, %v1267_v48 }
 0x2d1   : > { %v1287_v51 = vpop.xlane.xlu0 %1286  ;;  %v1270_v52 = vpop.xlane.xlu2 %1269 }
 0x2d2   : > { %v1295_v21 = vadd.f32 %v1294_v18, %v1287_v51  ;;  %v1293_v23 = vadd.f32 %v1292_v50, %v1270_v52 }
 0x2d3   : > { %v1290_v53 = vpop.xlane.xlu1 %1289 }
 0x2d4   : > { %v1297_v54 = vmul.f32 0.0009765625, %v1293_v23  ;;  %v1296_v55 = vadd.f32 %v1295_v21, %v1290_v53 }
 0x2d6   : > { %v1299_v56 = vmul.f32 %v1297_v54, %v1297_v54  ;;  %v1298_v59 = vmul.f32 0.0009765625, %v1296_v55 }
 0x2d8   : > { %v1300_v0 = vsub.f32 %v1298_v59, %v1299_v56 }
 0x2da   : > { %v1301_v1 = vmax.f32 %v1300_v0, 0.0 }
 0x2dc   : > { %v1302_v8 = vadd.f32 1e-05, %v1301_v1 }
 0x2de   : > { %1611 = vrsqrt.f32 %v1302_v8  ;;  %vm1309_vm11 = vweird.f32 %v1302_v8 }
 0x2e4   : > { %v1612_v9 = vpop.eup %1611 }
 0x2e5   : > { %v1304_v34 = vmul.f32 %v1612_v9, %v1302_v8  ;;  %vm1310_vm10 = vweird.f32 %v1612_v9 }
 0x2e6   : > { %vm1311_vm12 = vmor %vm1309_vm11, %vm1310_vm10 }
 0x2e7   : > { %v1305_v57 = vmul.f32 %v1612_v9, %v1304_v34 }
 0x2e9   : > { %v1306_v12 = vmul.f32 0.5, %v1305_v57 }
 0x2eb   : > { %v1307_v31 = vsub.f32 1.5, %v1306_v12 }
 0x2ed   : > { %v1308_v58 = vmul.f32 %v1612_v9, %v1307_v31 }
 0x2ef   : > { %v1312_v13 = vsel %vm1311_vm12, %v1612_v9, %v1308_v58 }
 0x2f0   : > { %1316 = vperm.xlu2 %1609, %v1312_v13   ;;  %v1313_v63 = vmul.f32 %v1312_v13, %v1297_v54 }
 0x2f2   : > { %1329 = vperm.xlu0 %1610, %v1313_v63  }
 0x34a   : > { %v1317_v60 = vpop.permute.xlu2 %1316 }
 0x34b   : > { %v1319_v25 = vmul.f32 %v1317_v60, %v2022_v46  ;;  %v1320_v26 = vmul.f32 %v1317_v60, %v2024_v47  ;;  %v1321_v14 = vmul.f32 %v1317_v60, %v2034_v5  ;;  %v1322_v11 = vmul.f32 %v1317_v60, %v2036_v7 }
 0x34c   : > { %v1323_v27 = vmul.f32 %v1317_v60, %v2050_v42  ;;  %v1324_v28 = vmul.f32 %v1317_v60, %v2052_v61  ;;  %v1325_v29 = vmul.f32 %v1317_v60, %v1257_v40  ;;  %v1326_v22 = vmul.f32 %v1317_v60, %v1258_v41 }
 0x364   : > { %v1330_v33 = vpop.permute.xlu0 %1329 }
 0x365   : > { %v1332_v17 = vsub.f32 %v1319_v25, %v1330_v33  ;;  %v1333_v19 = vsub.f32 %v1320_v26, %v1330_v33  ;;  %v1334_v39 = vsub.f32 %v1321_v14, %v1330_v33  ;;  %v1335_v62 = vsub.f32 %v1322_v11, %v1330_v33 }
 0x366   : > { %v1336_v46 = vsub.f32 %v1323_v27, %v1330_v33  ;;  %v1337_v47 = vsub.f32 %v1324_v28, %v1330_v33  ;;  %v1338_v5 = vsub.f32 %v1325_v29, %v1330_v33  ;;  %v1339_v42 = vsub.f32 %v1326_v22, %v1330_v33 }
 0x367   : > { %v1340_v7 = vmax.f32 %v1332_v17, 0.0  ;;  %v1341_v35 = vmax.f32 %v1333_v19, 0.0  ;;  %v1342_v36 = vmax.f32 %v1334_v39, 0.0  ;;  %v1343_v2 = vmax.f32 %v1335_v62, 0.0 }
 0x368   : > { %v1344_v61 = vmax.f32 %v1336_v46, 0.0  ;;  %v1345_v3 = vmax.f32 %v1337_v47, 0.0  ;;  %v1346_v37 = vmax.f32 %v1338_v5, 0.0  ;;  %v1347_v20 = vmax.f32 %v1339_v42, 0.0 }
 0x369   : > { %1348 = vst [vmem:[%s212_s18] sm:$0xff] %v1340_v7 }
 0x36a   : > { %1349 = vst [vmem:[%s212_s18 + $0x8] sm:$0xff] %v1341_v35 }
 0x36b   : > { %1350 = vst [vmem:[%s212_s18 + $0x10] sm:$0xff] %v1342_v36 }
 0x36c   : > { %1351 = vst [vmem:[%s212_s18 + $0x18] sm:$0xff] %v1343_v2 }
 0x36d   : > { %1352 = vst [vmem:[%s212_s18 + $0x20] sm:$0xff] %v1344_v61 }
 0x36e   : > { %1353 = vst [vmem:[%s212_s18 + $0x28] sm:$0xff] %v1345_v3 }
 0x36f   : > { %1354 = vst [vmem:[%s212_s18 + $0x30] sm:$0xff] %v1346_v37 }
 0x370   : > { %1355 = vst [vmem:[%s212_s18 + $0x38] sm:$0xff] %v1347_v20 }
 0x371 PF: > { %s13_s14 = sadd.s32 1, %s1635_s14   ;;  %s2087_s12 = smov %s1631_s13 }
 0x372   : > { %p10_p5 = scmp.ge.s32.totalorder %s13_s14, 4   ;;  %s2088_s13 = smov %s2090_s15 }
 0x374   :  { %12 = sbr.rel (!%p10_p5) target bundleno = 2 (0x2), region = 81 }

</bundles_post_ra>
